<compile_context>
chip_gen: v7x
topology: tpu7x:2x2x1
jax: 0.10.0
libtpu: 0.0.40
codegen_flags: <defaults>
</compile_context>

<pallas_src>
import jax
import jax.numpy as jnp
from jax.experimental import pallas as pl
from jax.experimental.pallas import tpu as pltpu


def _scale_kernel(temp_ref, x_ref, o_ref):
    # temp_ref: SMEM (1,) float32 temperature
    # x_ref / o_ref: (tile_rows, lanes) VMEM tiles
    t = temp_ref[0]
    # Divide in f32 (mem-bound kernel: the VPU work is free under DMA).
    o_ref[...] = (x_ref[...].astype(jnp.float32) / t).astype(o_ref.dtype)


def _round_up(x: int, m: int) -> int:
    return ((x + m - 1) // m) * m


def temperature_scale(
    logits: jax.Array,
    temperature: jax.Array,
    *,
    max_tile_rows: int = 1024,      # ~4 MiB f32 tile at 1024 lanes
    max_lanes: int = 1024,          # multiple of 128 -> lane-dense stores
    min_pallas_elems: int = 64 * 1024,
) -> jax.Array:
    """logits / temperature with a Pallas TPU kernel for large inputs.

    Accepts logits of any shape/dtype; temperature is a scalar (or shape (1,))
    float32 parameter.  Output dtype follows torch promotion (f32 for float /
    integer logits divided by an f32 parameter).
    """
    orig_shape = logits.shape
    orig_dtype = logits.dtype
    out_dtype = jnp.promote_types(orig_dtype, jnp.float32)
    total = int(logits.size)

    temp = jnp.asarray(temperature, dtype=jnp.float32).reshape(1)

    if total == 0:
        return logits.astype(out_dtype)

    # --- Small-input bypass: a fused XLA op beats kernel launch + repack. ---
    if total < min_pallas_elems:
        return (logits.astype(jnp.float32) / temp[0]).astype(out_dtype)

    in_itemsize = jnp.dtype(orig_dtype).itemsize
    out_itemsize = jnp.dtype(out_dtype).itemsize
    # Sublane granularity of the (narrower) input dtype: f32 -> 8, bf16 -> 16.
    sub = 8 * max(1, 4 // max(1, in_itemsize))

    # Widest lane count (multiple of 128, <= max_lanes) that divides `total`,
    # so the flatten/reshape is a zero-copy bitcast and no padding is needed.
    lanes = 0
    for cand in range(max_lanes, 0, -128):
        if total % cand == 0:
            lanes = cand
            break

    flat = logits.reshape(-1)
    if lanes:
        rows = total // lanes
        pad = 0
    else:
        # Nothing divides: pad only up to rows*lanes (<= lanes-1 elements).
        lanes = max_lanes
        rows = pl.cdiv(total, lanes)
        pad = rows * lanes - total
        flat = jnp.pad(flat, (0, pad))
    slab = flat.reshape(rows, lanes)

    # --- Tile / grid selection -------------------------------------------
    if rows <= sub:
        tile_rows = rows            # single full-array block (grid = 1)
    else:
        # Keep per-tile bytes roughly constant even for narrower lane counts.
        row_cap = max_tile_rows * max(1, max_lanes // lanes)
        tile_rows = max(sub, min(row_cap, _round_up(pl.cdiv(rows, 2), sub)))
    grid = pl.cdiv(rows, tile_rows)

    # v7x has 2 TensorCores: keep the (parallel) grid even so work balances.
    if grid >= 2 and grid % 2 == 1:
        t_try = tile_rows
        while t_try > sub and pl.cdiv(rows, t_try) % 2 == 1:
            t_try -= sub
        if t_try >= sub and pl.cdiv(rows, t_try) % 2 == 0:
            tile_rows = t_try
            grid = pl.cdiv(rows, tile_rows)

    # VMEM budget: double-buffered input + output tiles plus slack.  Stays
    # well under v7x's 64 MiB/TC; explicit limit covers v5e's 16 MiB default.
    in_tile_bytes = tile_rows * lanes * in_itemsize
    out_tile_bytes = tile_rows * lanes * out_itemsize
    vmem_limit = min(48 * 1024 * 1024,
                     2 * (in_tile_bytes + out_tile_bytes) + (2 << 20))

    # NOTE: input_output_aliases={1: 0} on the pad path (fresh temp slab) would
    # halve temporary HBM footprint, but outside jit XLA inserts a defensive
    # copy for the must-alias, so it is intentionally omitted here.
    out_slab = pl.pallas_call(
        _scale_kernel,
        out_shape=jax.ShapeDtypeStruct((rows, lanes), out_dtype),
        grid=(grid,),
        in_specs=[
            pl.BlockSpec(memory_space=pltpu.SMEM),               # temperature
            pl.BlockSpec((tile_rows, lanes), lambda i: (i, 0)),  # logits slab
        ],
        out_specs=pl.BlockSpec((tile_rows, lanes), lambda i: (i, 0)),
        compiler_params=pltpu.CompilerParams(
            dimension_semantics=("parallel",),
            vmem_limit_bytes=vmem_limit,
        ),
    )(temp, slab)

    out = out_slab.reshape(-1)
    if pad:
        out = out[:total]
    return out.reshape(orig_shape)


class ScalerPallas:
    """JAX/Pallas analogue of torch_uncertainty Scaler (temperature variant).

    forward(logits) -> logits / temperature   (no_grad semantics; pure function)
    """

    trained = False

    def __init__(self, lr: float = 0.1, max_iter: int = 100) -> None:
        if lr <= 0:
            raise ValueError("Learning rate must be positive.")
        if max_iter <= 0:
            raise ValueError("Max iterations must be positive.")
        self.lr = lr
        self.max_iter = int(max_iter)
        # Deterministic parameter init (1.5 so scaling is visibly non-trivial).
        self._temperature = jnp.array([1.5], dtype=jnp.float32)

    @property
    def temperature(self) -> list:
        return [self._temperature]

    def _scale(self, logits: jax.Array) -> jax.Array:
        return temperature_scale(logits, self._temperature)

    def __call__(self, logits: jax.Array) -> jax.Array:
        if not self.trained:
            print("TemperatureScaler has not been trained yet. "
                  "Returning a manually tempered input.")
        return self._scale(logits)

    # TODO(synk): fit()/fit_predict() require an LBFGS optimization loop over a
    # calibration DataLoader — training-time host logic with no Pallas
    # equivalent; omitted.


if __name__ == "__main__":
    key = jax.random.PRNGKey(0)
    k1, k2, k3, k4, k5 = jax.random.split(key, 5)

    scaler = ScalerPallas(lr=0.1, max_iter=100)
    t = scaler._temperature[0]

    # Case 1: canonical calibration-sized [N, C] logits -> plain-JAX bypass.
    x1 = jax.random.normal(k1, (32, 10), dtype=jnp.float32)
    o1 = jax.block_until_ready(scaler._scale(x1))
    assert o1.shape == x1.shape and o1.dtype == jnp.float32
    assert jnp.allclose(o1, x1 / t, atol=1e-6, rtol=1e-6)

    # Case 2: large enough to take the Pallas path naturally
    # (zero-copy repack, lanes=1024, grid=2 full row tiles).
    x2 = jax.random.normal(k2, (512, 256), dtype=jnp.float32)
    o2 = jax.block_until_ready(scaler._scale(x2))
    assert o2.shape == x2.shape
    assert jnp.allclose(o2, x2 / t, atol=1e-6, rtol=1e-6)

    # Case 3: small 4-D activations with the kernel forced on
    # (grid=1, full-array block, no padding).
    x3 = jax.random.normal(k3, (2, 4, 16, 16), dtype=jnp.float32)
    o3 = jax.block_until_ready(
        temperature_scale(x3, scaler._temperature, min_pallas_elems=0))
    assert o3.shape == x3.shape
    assert jnp.allclose(o3, x3 / t, atol=1e-6, rtol=1e-6)

    # Case 4: ragged shape with no 128-multiple divisor -> minimal pad path
    # (pad <= lanes-1 elements) + partial last row block.
    x4 = jax.random.normal(k4, (129, 130), dtype=jnp.float32)
    o4 = jax.block_until_ready(
        temperature_scale(x4, scaler._temperature, min_pallas_elems=0))
    assert o4.shape == x4.shape
    assert jnp.allclose(o4, x4 / t, atol=1e-6, rtol=1e-6)

    # Case 5: bf16 logits -> f32 output (torch promotion), kernel path.
    x5 = jax.random.normal(k5, (2, 4, 16, 16), dtype=jnp.bfloat16)
    o5 = jax.block_until_ready(
        temperature_scale(x5, scaler._temperature, min_pallas_elems=0))
    assert o5.dtype == jnp.float32
    assert jnp.allclose(o5, x5.astype(jnp.float32) / t, atol=1e-6, rtol=1e-6)

    print("KERNEL_OK")
</pallas_src>

<mosaic_0001>
module attributes {stable_mosaic.version = 11 : i64} {
  func.func @_scale_kernel(%arg0: i32, %arg1: memref<1xf32, #tpu.memory_space<smem>>, %arg2: memref<64x1024xf32, #tpu.memory_space<vmem>>, %arg3: memref<64x1024xf32, #tpu.memory_space<vmem>>) attributes {dimension_semantics = [#tpu.dimension_semantics<parallel>], iteration_bounds = array<i64: 2>, scalar_prefetch = 0 : i64, scratch_operands = 0 : i64, tpu.core_type = #tpu.core_type<tc>, window_params = [{transform_indices = @transform_0, window_bounds = array<i64: 1>}, {transform_indices = @transform_1, window_bounds = array<i64: 64, 1024>}, {transform_indices = @transform_2, window_bounds = array<i64: 64, 1024>}]} {
    %c0 = arith.constant 0 : index
    %0 = memref.load %arg1[%c0] : memref<1xf32, #tpu.memory_space<smem>>
    %c0_0 = arith.constant 0 : index
    %c0_1 = arith.constant 0 : index
    %1 = vector.load %arg2[%c0_0, %c0_1] : memref<64x1024xf32, #tpu.memory_space<vmem>>, vector<64x1024xf32>
    %2 = vector.broadcast %0 : f32 to vector<64x1024xf32>
    %3 = arith.divf %1, %2 : vector<64x1024xf32>
    %c0_2 = arith.constant 0 : index
    %c0_3 = arith.constant 0 : index
    %4 = vector.load %arg3[%c0_2, %c0_3] : memref<64x1024xf32, #tpu.memory_space<vmem>>, vector<64x1024xf32>
    tpu.vector_store %arg3[%c0_2, %c0_3], %3 {strides = array<i32>} : memref<64x1024xf32, #tpu.memory_space<vmem>>, vector<64x1024xf32>,
    return
  }
  func.func @transform_0(%arg0: i32) -> i32 {
    %c0_i32 = arith.constant 0 : i32
    %c0_i32_0 = arith.constant 0 : i32
    return %c0_i32 : i32
  }
  func.func @transform_1(%arg0: i32) -> (i32, i32) {
    %c0_i32 = arith.constant 0 : i32
    %c0_i32_0 = arith.constant 0 : i32
    return %arg0, %c0_i32 : i32, i32
  }
  func.func @transform_2(%arg0: i32) -> (i32, i32) {
    %c0_i32 = arith.constant 0 : i32
    %c0_i32_0 = arith.constant 0 : i32
    return %arg0, %c0_i32 : i32, i32
  }
}

</mosaic_0001>

<bundles_post_ra>
// kernel: tpu_custom_call.1
= control target key start
LH: loop header
LB: loop body
LE: loop exit
PB: predicated region body
PF: predicated region fallthrough
CT: control target
= control target key end

     0   :  { %s1012_s0 = inlined_call_operand.<no memory space> [shape: f32[1], index: 0, kind: input, shape index: {}]   ;;  %s1013_s1 = inlined_call_operand.hbm [shape: f32[128,1024], index: 1, kind: input, shape index: {}]   ;;  %s1014_s2 = inlined_call_operand.hbm [shape: f32[128,1024], index: 2, kind: output, shape index: {}]  }
   0x1   :  { %7 = sst [smem:[#allocation2]] %s1012_s0 }
   0x2   :  { %8 = vsyncpa [#allocation4], 0 }
   0x3   :  { %10 = vsyncpa [#allocation4 + $0x1], 0 }
   0x4   :  { %11 = vsyncpa [#allocation5], 0 }
   0x5   :  { %13 = vsyncpa [#allocation5 + $0x1], 0  ;;  %s643_s11 = smov 0   ;;  %s645_s12 = smov 0  }
   0x6   :  { %s647_s13 = smov 0   ;;  %s649_s14 = smov 0  }
   0x7 LB: > { %s664_s0 = sadd.s32 4294967295, %s617_s14   ;;  %s449_s15 = sadd.s32 4294967294, %s617_s14   ;;  %s617_s14 = sphi %s649_s14, %s1027_s14   ;;  %s613_s13 = sphi %s647_s13, %s1026_s13   ;;  %s609_s12 = sphi %s645_s12, %s1025_s12   ;;  %s605_s11 = sphi %s643_s11, %s1024_s11  }
   0x8   : > { %s668_s16 = sadd.s32 1, %s617_s14   ;;  %s47_s17 = sadd.s32 1, %s613_s13 }
   0x9   : > { %s44_s18 = ssub.s32 %s617_s14, %s668_s16  ;;  %p54_p0 = scmp.ne.s32.totalorder %s613_s13, %s609_s12 }
   0xa   : > { %p45_p1 = scmp.eq.s32.totalorder %s44_s18, 0  ;;  %p55_p2 = scmp.eq.s32.totalorder %s617_s14, 0 }
   0xb   : > { %p60_p3 = scmp.ne.s32.totalorder %s609_s12, %s605_s11  ;;  %p61_p4 = scmp.eq.s32.totalorder %s664_s0, 0 }
   0xc   : > { %s680_s19 = scalar_select %p45_p1, %s613_s13, %s47_s17  }
   0xd   : > { %p682_p5 = por %p55_p2, %p54_p0  ;;  %p686_p6 = por %p61_p4, %p60_p3 }
   0xe   : > { %p84_p7 = scmp.eq.s32.totalorder %s664_s0, 1  ;;  %p90_p8 = scmp.eq.s32.totalorder %s449_s15, 1 }
   0xf   : > { %p481_p10 = scmp.lt.s32.totalorder %s617_s14, 2  ;;  %s113_s24 = sand.u32 1, %s613_s13  }
  0x10   : > { %p693_p11 = por %p84_p7, %p54_p0  ;;  %p697_p12 = por %p90_p8, %p60_p3 }
  0x11   : > { %s466_s25 = sshll.u32 %s617_s14, 13  ;;  %s452_s26 = sshll.u32 %s113_s24, 9 }
  0x12   : > { %s1018_s22 = scalar_select %p693_p11, 1, 0 }
  0x13   : > { %s1019_s23 = scalar_select %p697_p12, 1, 0 }
  0x14   : > { %s706_s29 = scalar_lea.hbm %s1013_s1, %s466_s25  ;;  %s117_s30 = scalar_lea.vmem [#allocation3], %s452_s26 }
  0x15   : > { %s125_s3 = sshll.u32 %s117_s30, 4  ;;  %p710_p13 = pnand %p481_p10, %p682_p5  ;;  %s714_s3 = int_to_ptr.vmem [resolvable:$true] %s125_s3 }
  0x16   : > { %s716_s5 = scalar_lea.sflag [#allocation4], %s113_s24  ;;  %s521_s6 = scalar_lea.hbm %s706_s29, 8192 }
  0x17   : > { %p522_p0 = scmp.ne.s32.totalorder %s706_s29, %s521_s6  ;;  %p523_p1 = pneg %p710_p13 }
  0x18   : > { %s526_s9 = scalar_lea.hbm %s1013_s1, 16384  ;;  %p527_p4 = scmp.lt.u32.totalorder %s706_s29, %s1013_s1 }
  0x19   : > { %p524_p2 = pnand %p523_p1, %p522_p0  ;;  %p528_p5 = scmp.lt.u32.totalorder %s526_s9, %s521_s6 }
  0x1a   : > { %p530_p8 = scmp.lt.u32.totalorder %s521_s6, %s706_s29 }
  0x1b   : > { %p525_p3 = pneg %p524_p2  ;;  %p529_p7 = por %p528_p5, %p527_p4 }
  0x1d   : > { %p531_p10 = por %p530_p8, %p529_p7 }
  0x1f   : > { %p532_p9 = pnand %p531_p10, %p525_p3 }
  0x21   : > { %535 = shalt.err (!%p532_p9)
}
  0x22   : > { %s536_s17 = scalar_lea.vmem %s714_s3, 8192  ;;  %s619_s18 = smov [#allocation3]  }
  0x23   : > { %p537_p0 = scmp.ne.s32.totalorder %s714_s3, %s536_s17  ;;  %s541_s20 = sshll.u32 %s619_s18, 4  ;;  %s542_s20 = int_to_ptr.vmem [resolvable:$false] %s541_s20 }
  0x24   : > { %s543_s24 = scalar_lea.vmem %s542_s20, 16384  ;;  %p544_p11 = scmp.lt.s32.totalorder %s714_s3, %s542_s20 }
  0x25   : > { %p539_p2 = pnand %p537_p0, %p523_p1  ;;  %p545_p4 = scmp.lt.s32.totalorder %s543_s24, %s536_s17 }
  0x27   : > { %p540_p12 = pneg %p539_p2  ;;  %p546_p5 = por %p545_p4, %p544_p11 }
  0x29   : > { %p547_p7 = pnand %p546_p5, %p540_p12 }
  0x2b   : > { %550 = shalt.err (!%p547_p7)
}
  0x2c   : > { %s620_s25 = smov 1024   ;;  %s621_s26 = smov 64  }
  0x2d   : > { %476 = dma.hbm_to_vmem [thread:$0]  (!%p710_p13), %s706_s29, 8192, %s714_s3, %s716_s5, %s620_s25, %s620_s25, %s621_s26  }
  0x2e   : > { %p456_p9 = scmp.ge.s32.totalorder %s617_s14, 1  ;;  %p133_p1 = scmp.lt.s32.totalorder %s617_s14, 3 }
  0x30   : > { %p134_p3 = pnand %p456_p9, %p133_p1 }
  0x31   : > { %s747_s27 = sand.u32 (!%p134_p3), 1, %s609_s12  }
  0x32   : > { %137 = sbr.rel (%p134_p3) target bundleno = 124 (0x7c), region = 28  ;;  %s457_s28 = sshll.u32 (!%p134_p3), %s747_s27, 9 }
  0x33   : > { %s140_s30 = scalar_lea.sflag (!%p134_p3), [#allocation4], %s747_s27  ;;  %s753_s6 = scalar_lea.vmem (!%p134_p3), [#allocation3], %s457_s28 }
  0x39   : > { %596 = dma.done.wait (%p686_p6), %s140_s30, 8192  }
  0x3a   : > { %598 = vsyncadd (%p686_p6), %s140_s30, 4294959104  ;;  %s166_s29 = sld [smem:[#allocation2]]  ;;  %v167_v1 = vld [vmem:[%s753_s6] sm:$0xff]  ;;  %v168_v2 = vld [vmem:[%s753_s6 + $0x8] sm:$0xff]  ;;  %s799_s21 = scalar_lea.vmem [#allocation6], %s457_s28 }
  0x3b   : > { %v169_v3 = vld [vmem:[%s753_s6 + $0x10] sm:$0xff]  ;;  %v170_v4 = vld [vmem:[%s753_s6 + $0x18] sm:$0xff]  ;;  %v171_v5 = vld [vmem:[%s753_s6 + $0x20] sm:$0xff]  ;;  %s468_s3 = sshll.u32 %s664_s0, 13  ;;  %s376_s4 = sshll.u32 %s799_s21, 4  ;;  %s952_s4 = int_to_ptr.vmem [resolvable:$true] %s376_s4 }
  0x3c   : > { %v172_v6 = vld [vmem:[%s753_s6 + $0x28] sm:$0xff]  ;;  %v173_v7 = vld [vmem:[%s753_s6 + $0x30] sm:$0xff]  ;;  %v174_v8 = vld [vmem:[%s753_s6 + $0x38] sm:$0xff]  ;;  %s948_s8 = scalar_lea.hbm %s1014_s2, %s468_s3  ;;  %s362_s0 = scalar_lea.sflag [#allocation5], %s747_s27 }
  0x3d   : > { %v175_v9 = vld [vmem:[%s753_s6 + $0x40] sm:$0xff]  ;;  %v176_v10 = vld [vmem:[%s753_s6 + $0x48] sm:$0xff]  ;;  %v177_v11 = vld [vmem:[%s753_s6 + $0x50] sm:$0xff]  ;;  %s551_s9 = scalar_lea.vmem %s952_s4, 8192  ;;  %p1021_p11 = scmp.ne.s32.totalorder %s1018_s22, 0 }
  0x3e   : > { %v178_v12 = vld [vmem:[%s753_s6 + $0x58] sm:$0xff]  ;;  %v179_v13 = vld [vmem:[%s753_s6 + $0x60] sm:$0xff]  ;;  %v180_v14 = vld [vmem:[%s753_s6 + $0x68] sm:$0xff]  ;;  %p552_p6 = scmp.ne.s32.totalorder %s952_s4, %s551_s9  ;;  %s622_s10 = smov [#allocation6]  }
  0x3f   : > { %v181_v15 = vld [vmem:[%s753_s6 + $0x70] sm:$0xff]  ;;  %v182_v16 = vld [vmem:[%s753_s6 + $0x78] sm:$0xff]  ;;  %v183_v18 = vld [vmem:[%s753_s6 + $0x80] sm:$0xff]  ;;  %s555_s15 = sshll.u32 %s622_s10, 4  ;;  %s556_s15 = int_to_ptr.vmem [resolvable:$false] %s555_s15 }
  0x40   : > { %v231_v0 = vstv %s166_s29  ;;  %v184_v19 = vld [vmem:[%s753_s6 + $0x88] sm:$0xff]  ;;  %v185_v20 = vld [vmem:[%s753_s6 + $0x90] sm:$0xff]  ;;  %v186_v21 = vld [vmem:[%s753_s6 + $0x98] sm:$0xff]  ;;  %p553_p12 = pnand %p552_p6, %p1021_p11  ;;  %s557_s17 = scalar_lea.vmem %s556_s15, 16384 }
  0x41   : > { %519 = vrcp.f32 %v231_v0  ;;  %v187_v26 = vld [vmem:[%s753_s6 + $0xa0] sm:$0xff]  ;;  %v188_v27 = vld [vmem:[%s753_s6 + $0xa8] sm:$0xff]  ;;  %v189_v28 = vld [vmem:[%s753_s6 + $0xb0] sm:$0xff]  ;;  %p558_p8 = scmp.lt.s32.totalorder %s952_s4, %s556_s15  ;;  %p559_p10 = scmp.lt.s32.totalorder %s557_s17, %s551_s9 }
  0x42   : > { %v190_v29 = vld [vmem:[%s753_s6 + $0xb8] sm:$0xff]  ;;  %v191_v34 = vld [vmem:[%s753_s6 + $0xc0] sm:$0xff]  ;;  %v192_v35 = vld [vmem:[%s753_s6 + $0xc8] sm:$0xff]  ;;  %p554_p13 = pneg %p553_p12 }
  0x43   : > { %v193_v36 = vld [vmem:[%s753_s6 + $0xd0] sm:$0xff]  ;;  %v194_v37 = vld [vmem:[%s753_s6 + $0xd8] sm:$0xff]  ;;  %v195_v42 = vld [vmem:[%s753_s6 + $0xe0] sm:$0xff]  ;;  %p560_p0 = por %p559_p10, %p558_p8 }
  0x44   : > { %v196_v43 = vld [vmem:[%s753_s6 + $0xe8] sm:$0xff]  ;;  %v197_v44 = vld [vmem:[%s753_s6 + $0xf0] sm:$0xff]  ;;  %v198_v45 = vld [vmem:[%s753_s6 + $0xf8] sm:$0xff] }
  0x45   : > { %v199_v50 = vld [vmem:[%s753_s6 + $0x100] sm:$0xff]  ;;  %v200_v51 = vld [vmem:[%s753_s6 + $0x108] sm:$0xff]  ;;  %v201_v52 = vld [vmem:[%s753_s6 + $0x110] sm:$0xff]  ;;  %p561_p2 = pnand %p560_p0, %p554_p13 }
  0x46   : > { %v202_v53 = vld [vmem:[%s753_s6 + $0x118] sm:$0xff]  ;;  %v203_v58 = vld [vmem:[%s753_s6 + $0x120] sm:$0xff]  ;;  %v204_v59 = vld [vmem:[%s753_s6 + $0x128] sm:$0xff] }
  0x47   : > { %v205_v60 = vld [vmem:[%s753_s6 + $0x130] sm:$0xff]  ;;  %v206_v61 = vld [vmem:[%s753_s6 + $0x138] sm:$0xff] }
  0x4b   : > { %v775_v17 = vpop.eup %519 }
  0x4c   : > { %v233_v22 = vmul.f32 %v775_v17, %v167_v1  ;;  %v234_v23 = vmul.f32 %v775_v17, %v168_v2  ;;  %v235_v24 = vmul.f32 %v775_v17, %v169_v3  ;;  %v236_v25 = vmul.f32 %v775_v17, %v170_v4  ;;  %v207_v2 = vld [vmem:[%s753_s6 + $0x140] sm:$0xff]  ;;  %v208_v3 = vld [vmem:[%s753_s6 + $0x148] sm:$0xff]  ;;  %v209_v4 = vld [vmem:[%s753_s6 + $0x150] sm:$0xff] }
  0x4d   : > { %v237_v30 = vmul.f32 %v775_v17, %v171_v5  ;;  %v238_v31 = vmul.f32 %v775_v17, %v172_v6  ;;  %v239_v32 = vmul.f32 %v775_v17, %v173_v7  ;;  %v240_v33 = vmul.f32 %v775_v17, %v174_v8 }
  0x4e   : > { %297 = vst [vmem:[%s799_s21] sm:$0xff] %v233_v22  ;;  %298 = vst [vmem:[%s799_s21 + $0x8] sm:$0xff] %v234_v23  ;;  %v241_v38 = vmul.f32 %v775_v17, %v175_v9  ;;  %v242_v39 = vmul.f32 %v775_v17, %v176_v10  ;;  %v243_v40 = vmul.f32 %v775_v17, %v177_v11  ;;  %v210_v9 = vld [vmem:[%s753_s6 + $0x158] sm:$0xff]  ;;  %v211_v10 = vld [vmem:[%s753_s6 + $0x160] sm:$0xff] }
  0x4f   : > { %299 = vst [vmem:[%s799_s21 + $0x10] sm:$0xff] %v235_v24  ;;  %300 = vst [vmem:[%s799_s21 + $0x18] sm:$0xff] %v236_v25  ;;  %v244_v41 = vmul.f32 %v775_v17, %v178_v12  ;;  %v245_v46 = vmul.f32 %v775_v17, %v179_v13  ;;  %v246_v47 = vmul.f32 %v775_v17, %v180_v14  ;;  %v212_v11 = vld [vmem:[%s753_s6 + $0x168] sm:$0xff]  ;;  %v217_v25 = vld [vmem:[%s753_s6 + $0x190] sm:$0xff] }
  0x50   : > { %301 = vst [vmem:[%s799_s21 + $0x20] sm:$0xff] %v237_v30  ;;  %302 = vst [vmem:[%s799_s21 + $0x28] sm:$0xff] %v238_v31  ;;  %v247_v48 = vmul.f32 %v775_v17, %v181_v15  ;;  %v248_v49 = vmul.f32 %v775_v17, %v182_v16  ;;  %v249_v54 = vmul.f32 %v775_v17, %v183_v18  ;;  %v213_v16 = vld [vmem:[%s753_s6 + $0x170] sm:$0xff]  ;;  %v214_v18 = vld [vmem:[%s753_s6 + $0x178] sm:$0xff] }
  0x51   : > { %303 = vst [vmem:[%s799_s21 + $0x30] sm:$0xff] %v239_v32  ;;  %304 = vst [vmem:[%s799_s21 + $0x38] sm:$0xff] %v240_v33  ;;  %v250_v55 = vmul.f32 %v775_v17, %v184_v19  ;;  %v251_v56 = vmul.f32 %v775_v17, %v185_v20  ;;  %v252_v57 = vmul.f32 %v775_v17, %v186_v21  ;;  %v215_v19 = vld [vmem:[%s753_s6 + $0x180] sm:$0xff]  ;;  %v216_v24 = vld [vmem:[%s753_s6 + $0x188] sm:$0xff] }
  0x52   : > { %305 = vst [vmem:[%s799_s21 + $0x40] sm:$0xff] %v241_v38  ;;  %306 = vst [vmem:[%s799_s21 + $0x48] sm:$0xff] %v242_v39  ;;  %v253_v62 = vmul.f32 %v775_v17, %v187_v26  ;;  %v254_v63 = vmul.f32 %v775_v17, %v188_v27  ;;  %v255_v0 = vmul.f32 %v775_v17, %v189_v28  ;;  %v218_v26 = vld [vmem:[%s753_s6 + $0x198] sm:$0xff]  ;;  %v219_v31 = vld [vmem:[%s753_s6 + $0x1a0] sm:$0xff] }
  0x53   : > { %307 = vst [vmem:[%s799_s21 + $0x50] sm:$0xff] %v243_v40  ;;  %308 = vst [vmem:[%s799_s21 + $0x58] sm:$0xff] %v244_v41  ;;  %v256_v1 = vmul.f32 %v775_v17, %v190_v29  ;;  %v257_v5 = vmul.f32 %v775_v17, %v191_v34  ;;  %v258_v6 = vmul.f32 %v775_v17, %v192_v35  ;;  %v220_v32 = vld [vmem:[%s753_s6 + $0x1a8] sm:$0xff]  ;;  %v221_v33 = vld [vmem:[%s753_s6 + $0x1b0] sm:$0xff] }
  0x54   : > { %309 = vst [vmem:[%s799_s21 + $0x60] sm:$0xff] %v245_v46  ;;  %310 = vst [vmem:[%s799_s21 + $0x68] sm:$0xff] %v246_v47  ;;  %v259_v7 = vmul.f32 %v775_v17, %v193_v36  ;;  %v260_v8 = vmul.f32 %v775_v17, %v194_v37  ;;  %v261_v12 = vmul.f32 %v775_v17, %v195_v42  ;;  %v222_v38 = vld [vmem:[%s753_s6 + $0x1b8] sm:$0xff]  ;;  %v223_v39 = vld [vmem:[%s753_s6 + $0x1c0] sm:$0xff] }
  0x55   : > { %311 = vst [vmem:[%s799_s21 + $0x70] sm:$0xff] %v247_v48  ;;  %312 = vst [vmem:[%s799_s21 + $0x78] sm:$0xff] %v248_v49  ;;  %v262_v13 = vmul.f32 %v775_v17, %v196_v43  ;;  %v263_v14 = vmul.f32 %v775_v17, %v197_v44  ;;  %v264_v15 = vmul.f32 %v775_v17, %v198_v45  ;;  %v224_v40 = vld [vmem:[%s753_s6 + $0x1c8] sm:$0xff]  ;;  %v225_v45 = vld [vmem:[%s753_s6 + $0x1d0] sm:$0xff] }
  0x56   : > { %313 = vst [vmem:[%s799_s21 + $0x80] sm:$0xff] %v249_v54  ;;  %314 = vst [vmem:[%s799_s21 + $0x88] sm:$0xff] %v250_v55  ;;  %v265_v20 = vmul.f32 %v775_v17, %v199_v50  ;;  %v266_v21 = vmul.f32 %v775_v17, %v200_v51  ;;  %v267_v22 = vmul.f32 %v775_v17, %v201_v52  ;;  %v226_v46 = vld [vmem:[%s753_s6 + $0x1d8] sm:$0xff]  ;;  %v227_v47 = vld [vmem:[%s753_s6 + $0x1e0] sm:$0xff] }
  0x57   : > { %315 = vst [vmem:[%s799_s21 + $0x90] sm:$0xff] %v251_v56  ;;  %316 = vst [vmem:[%s799_s21 + $0x98] sm:$0xff] %v252_v57  ;;  %v268_v23 = vmul.f32 %v775_v17, %v202_v53  ;;  %v269_v27 = vmul.f32 %v775_v17, %v203_v58  ;;  %v270_v28 = vmul.f32 %v775_v17, %v204_v59  ;;  %v228_v52 = vld [vmem:[%s753_s6 + $0x1e8] sm:$0xff]  ;;  %v229_v53 = vld [vmem:[%s753_s6 + $0x1f0] sm:$0xff] }
  0x58   : > { %317 = vst [vmem:[%s799_s21 + $0xa0] sm:$0xff] %v253_v62  ;;  %318 = vst [vmem:[%s799_s21 + $0xa8] sm:$0xff] %v254_v63  ;;  %v271_v29 = vmul.f32 %v775_v17, %v205_v60  ;;  %v272_v30 = vmul.f32 %v775_v17, %v206_v61  ;;  %v273_v34 = vmul.f32 %v775_v17, %v207_v2  ;;  %v230_v54 = vld [vmem:[%s753_s6 + $0x1f8] sm:$0xff] }
  0x59   : > { %319 = vst [vmem:[%s799_s21 + $0xb0] sm:$0xff] %v255_v0  ;;  %320 = vst [vmem:[%s799_s21 + $0xb8] sm:$0xff] %v256_v1  ;;  %v274_v35 = vmul.f32 %v775_v17, %v208_v3  ;;  %v275_v36 = vmul.f32 %v775_v17, %v209_v4  ;;  %v276_v37 = vmul.f32 %v775_v17, %v210_v9 }
  0x5a   : > { %321 = vst [vmem:[%s799_s21 + $0xc0] sm:$0xff] %v257_v5  ;;  %322 = vst [vmem:[%s799_s21 + $0xc8] sm:$0xff] %v258_v6  ;;  %v277_v41 = vmul.f32 %v775_v17, %v211_v10  ;;  %v278_v42 = vmul.f32 %v775_v17, %v212_v11  ;;  %v279_v43 = vmul.f32 %v775_v17, %v213_v16 }
  0x5b   : > { %323 = vst [vmem:[%s799_s21 + $0xd0] sm:$0xff] %v259_v7  ;;  %324 = vst [vmem:[%s799_s21 + $0xd8] sm:$0xff] %v260_v8  ;;  %v280_v44 = vmul.f32 %v775_v17, %v214_v18  ;;  %v281_v48 = vmul.f32 %v775_v17, %v215_v19  ;;  %v282_v49 = vmul.f32 %v775_v17, %v216_v24 }
  0x5c   : > { %325 = vst [vmem:[%s799_s21 + $0xe0] sm:$0xff] %v261_v12  ;;  %326 = vst [vmem:[%s799_s21 + $0xe8] sm:$0xff] %v262_v13  ;;  %v283_v50 = vmul.f32 %v775_v17, %v217_v25  ;;  %v284_v51 = vmul.f32 %v775_v17, %v218_v26  ;;  %v285_v55 = vmul.f32 %v775_v17, %v219_v31 }
  0x5d   : > { %327 = vst [vmem:[%s799_s21 + $0xf0] sm:$0xff] %v263_v14  ;;  %328 = vst [vmem:[%s799_s21 + $0xf8] sm:$0xff] %v264_v15  ;;  %v286_v56 = vmul.f32 %v775_v17, %v220_v32  ;;  %v287_v57 = vmul.f32 %v775_v17, %v221_v33  ;;  %v288_v58 = vmul.f32 %v775_v17, %v222_v38 }
  0x5e   : > { %329 = vst [vmem:[%s799_s21 + $0x100] sm:$0xff] %v265_v20  ;;  %330 = vst [vmem:[%s799_s21 + $0x108] sm:$0xff] %v266_v21  ;;  %v289_v59 = vmul.f32 %v775_v17, %v223_v39  ;;  %v290_v60 = vmul.f32 %v775_v17, %v224_v40  ;;  %v291_v61 = vmul.f32 %v775_v17, %v225_v45 }
  0x5f   : > { %331 = vst [vmem:[%s799_s21 + $0x110] sm:$0xff] %v267_v22  ;;  %332 = vst [vmem:[%s799_s21 + $0x118] sm:$0xff] %v268_v23  ;;  %v292_v62 = vmul.f32 %v775_v17, %v226_v46  ;;  %v293_v63 = vmul.f32 %v775_v17, %v227_v47  ;;  %v294_v0 = vmul.f32 %v775_v17, %v228_v52 }
  0x60   : > { %333 = vst [vmem:[%s799_s21 + $0x120] sm:$0xff] %v269_v27  ;;  %334 = vst [vmem:[%s799_s21 + $0x128] sm:$0xff] %v270_v28  ;;  %v295_v1 = vmul.f32 %v775_v17, %v229_v53  ;;  %v296_v2 = vmul.f32 %v775_v17, %v230_v54 }
  0x61   : > { %335 = vst [vmem:[%s799_s21 + $0x130] sm:$0xff] %v271_v29  ;;  %336 = vst [vmem:[%s799_s21 + $0x138] sm:$0xff] %v272_v30 }
  0x62   : > { %337 = vst [vmem:[%s799_s21 + $0x140] sm:$0xff] %v273_v34  ;;  %338 = vst [vmem:[%s799_s21 + $0x148] sm:$0xff] %v274_v35 }
  0x63   : > { %339 = vst [vmem:[%s799_s21 + $0x150] sm:$0xff] %v275_v36  ;;  %340 = vst [vmem:[%s799_s21 + $0x158] sm:$0xff] %v276_v37 }
  0x64   : > { %341 = vst [vmem:[%s799_s21 + $0x160] sm:$0xff] %v277_v41  ;;  %342 = vst [vmem:[%s799_s21 + $0x168] sm:$0xff] %v278_v42 }
  0x65   : > { %343 = vst [vmem:[%s799_s21 + $0x170] sm:$0xff] %v279_v43  ;;  %344 = vst [vmem:[%s799_s21 + $0x178] sm:$0xff] %v280_v44 }
  0x66   : > { %345 = vst [vmem:[%s799_s21 + $0x180] sm:$0xff] %v281_v48  ;;  %346 = vst [vmem:[%s799_s21 + $0x188] sm:$0xff] %v282_v49 }
  0x67   : > { %347 = vst [vmem:[%s799_s21 + $0x190] sm:$0xff] %v283_v50  ;;  %348 = vst [vmem:[%s799_s21 + $0x198] sm:$0xff] %v284_v51 }
  0x68   : > { %349 = vst [vmem:[%s799_s21 + $0x1a0] sm:$0xff] %v285_v55  ;;  %350 = vst [vmem:[%s799_s21 + $0x1a8] sm:$0xff] %v286_v56 }
  0x69   : > { %351 = vst [vmem:[%s799_s21 + $0x1b0] sm:$0xff] %v287_v57  ;;  %352 = vst [vmem:[%s799_s21 + $0x1b8] sm:$0xff] %v288_v58 }
  0x6a   : > { %353 = vst [vmem:[%s799_s21 + $0x1c0] sm:$0xff] %v289_v59  ;;  %354 = vst [vmem:[%s799_s21 + $0x1c8] sm:$0xff] %v290_v60 }
  0x6b   : > { %355 = vst [vmem:[%s799_s21 + $0x1d0] sm:$0xff] %v291_v61  ;;  %356 = vst [vmem:[%s799_s21 + $0x1d8] sm:$0xff] %v292_v62 }
  0x6c   : > { %357 = vst [vmem:[%s799_s21 + $0x1e0] sm:$0xff] %v293_v63  ;;  %358 = vst [vmem:[%s799_s21 + $0x1e8] sm:$0xff] %v294_v0 }
  0x6d   : > { %359 = vst [vmem:[%s799_s21 + $0x1f0] sm:$0xff] %v295_v1  ;;  %360 = vst [vmem:[%s799_s21 + $0x1f8] sm:$0xff] %v296_v2 }
  0x6e   : > { %564 = shalt.err (!%p561_p2)
}
  0x6f   : > { %s565_s18 = scalar_lea.hbm %s948_s8, 8192  ;;  %s569_s25 = scalar_lea.hbm %s1014_s2, 16384 }
  0x70   : > { %p566_p4 = scmp.ne.s32.totalorder %s948_s8, %s565_s18  ;;  %p570_p9 = scmp.lt.u32.totalorder %s948_s8, %s1014_s2 }
  0x71   : > { %p571_p1 = scmp.lt.u32.totalorder %s569_s25, %s565_s18  ;;  %p573_p6 = scmp.lt.u32.totalorder %s565_s18, %s948_s8 }
  0x72   : > { %p567_p5 = pnand %p566_p4, %p1021_p11 }
  0x73   : > { %p572_p3 = por %p571_p1, %p570_p9 }
  0x74   : > { %p568_p7 = pneg %p567_p5 }
  0x75   : > { %p574_p12 = por %p573_p6, %p572_p3 }
  0x77   : > { %p575_p13 = pnand %p574_p12, %p568_p7 }
  0x79   : > { %578 = shalt.err (!%p575_p13)
}
  0x7a   : > { %s623_s30 = smov 1024   ;;  %s624_s6 = smov 64  }
  0x7b   : > { %471 = dma.vmem_to_hbm [thread:$0]  (%p1021_p11), %s952_s4, 8192, %s948_s8, %s362_s0, %s623_s30, %s623_s30, %s624_s6  }
  0x7c PF: > { %s391_s29 = sand.u32 1, %s605_s11   ;;  %p1022_p8 = scmp.ne.s32.totalorder %s1019_s23, 0 }
  0x7d   : > { %p1023_p10 = scmp.ge.s32.totalorder %s617_s14, 2  ;;  %s392_s21 = scalar_lea.sflag [#allocation5], %s391_s29 }
  0x7f   : > { %p478_p0 = pnand %p1023_p10, %p1022_p8 }
  0x81   : > { %600 = dma.done.wait (!%p478_p0), %s392_s21, 8192  }
  0x82   : > { %602 = vsyncadd (!%p478_p0), %s392_s21, 4294959104  ;;  %p16_p2 = scmp.ge.s32.totalorder %s668_s16, 4   ;;  %s1024_s11 = smov %s609_s12 }
  0x83   : > { %s1025_s12 = smov %s613_s13  ;;  %s1026_s13 = smov %s680_s19 }
  0x84   : > { %s1027_s14 = smov %s668_s16  ;;  %18 = sbr.rel (!%p16_p2) target bundleno = 7 (0x7), region = 73 }
  0x8b   :  { %397 = vsyncpa [#allocation4], 1 }
  0x8c   :  { %399 = vsyncpa [#allocation4 + $0x1], 1 }
  0x8d   :  { %400 = vsyncpa [#allocation5], 1 }
  0x8e   :  { %402 = vsyncpa [#allocation5 + $0x1], 1 }

</bundles_post_ra>
